<compile_context>
chip_gen: v5e
topology: v5e:2x2
jax: 0.10.0
libtpu: 0.0.40
codegen_flags: <defaults>
</compile_context>

<pallas_src>
import math
import numpy as np
import jax
import jax.numpy as jnp
from jax import lax
from jax.experimental import pallas as pl
from jax.experimental.pallas import tpu as pltpu


# ----------------------------------------------------------------------------
# Small helpers
# ----------------------------------------------------------------------------

def _elu(v, alpha):
    # Clamp the exp argument so the unselected branch never produces inf.
    return jnp.where(v > 0, v, alpha * (jnp.exp(jnp.minimum(v, 0.0)) - 1.0))


def _row_tile(M, cap=256):
    """Row-tile size: full block for small M, 256-row tiles when M divides evenly."""
    if M > cap and M % cap == 0:
        return cap
    return M


_PARALLEL_1D = pltpu.CompilerParams(dimension_semantics=("parallel",))


# ----------------------------------------------------------------------------
# Pallas kernels
# ----------------------------------------------------------------------------

def _make_mm_kernel(pre_act, act, alpha):
    def kernel(a_ref, b_ref, bias_ref, o_ref):
        a = a_ref[...]
        if pre_act == "elu":
            a = _elu(a, alpha)
        acc = jnp.dot(a.astype(jnp.bfloat16), b_ref[...].astype(jnp.bfloat16),
                      preferred_element_type=jnp.float32)
        acc = acc + bias_ref[...]
        if act == "elu":
            acc = _elu(acc, alpha)
        elif act == "tanh":
            acc = jnp.tanh(acc)
        o_ref[...] = acc
    return kernel


def pallas_matmul(a, b, bias=None, pre_act=None, act=None, alpha=1.0):
    """(M,K) @ (K,N) + bias with optional fused pre-ELU / post-ELU / post-Tanh."""
    a = a.astype(jnp.float32)
    b = b.astype(jnp.float32)
    M, K = a.shape
    K2, N = b.shape
    assert K == K2
    if bias is None:
        bias = jnp.zeros((N,), jnp.float32)
    bias2d = bias.reshape(1, N).astype(jnp.float32)
    tm = _row_tile(M)
    return pl.pallas_call(
        _make_mm_kernel(pre_act, act, alpha),
        out_shape=jax.ShapeDtypeStruct((M, N), jnp.float32),
        grid=(M // tm,),
        in_specs=[pl.BlockSpec((tm, K), lambda i: (i, 0)),
                  pl.BlockSpec((K, N), lambda i: (0, 0)),
                  pl.BlockSpec((1, N), lambda i: (0, 0))],
        out_specs=pl.BlockSpec((tm, N), lambda i: (i, 0)),
        compiler_params=_PARALLEL_1D,
    )(a, b, bias2d)


def _make_resblock_kernel(alpha):
    """Fused residual block: ELU -> conv1 -> ELU -> conv2, plus 1x1 shortcut + add."""
    def kernel(cols_ref, xf_ref, w1_ref, b1_ref, w2_ref, b2_ref, ws_ref, bs_ref, o_ref):
        a = _elu(cols_ref[...], alpha)
        h = jnp.dot(a.astype(jnp.bfloat16), w1_ref[...].astype(jnp.bfloat16),
                    preferred_element_type=jnp.float32) + b1_ref[...]
        h = _elu(h, alpha)
        h = jnp.dot(h.astype(jnp.bfloat16), w2_ref[...].astype(jnp.bfloat16),
                    preferred_element_type=jnp.float32) + b2_ref[...]
        s = jnp.dot(xf_ref[...].astype(jnp.bfloat16), ws_ref[...].astype(jnp.bfloat16),
                    preferred_element_type=jnp.float32) + bs_ref[...]
        o_ref[...] = s + h
    return kernel


def _resblock_call(cols, xf, w1m, b1, w2m, b2, wsm, bs, alpha):
    M, CK = cols.shape
    C = xf.shape[1]
    Cmid = w1m.shape[1]
    tm = _row_tile(M)
    return pl.pallas_call(
        _make_resblock_kernel(alpha),
        out_shape=jax.ShapeDtypeStruct((M, C), jnp.float32),
        grid=(M // tm,),
        in_specs=[pl.BlockSpec((tm, CK), lambda i: (i, 0)),
                  pl.BlockSpec((tm, C), lambda i: (i, 0)),
                  pl.BlockSpec((CK, Cmid), lambda i: (0, 0)),
                  pl.BlockSpec((1, Cmid), lambda i: (0, 0)),
                  pl.BlockSpec((Cmid, C), lambda i: (0, 0)),
                  pl.BlockSpec((1, C), lambda i: (0, 0)),
                  pl.BlockSpec((C, C), lambda i: (0, 0)),
                  pl.BlockSpec((1, C), lambda i: (0, 0))],
        out_specs=pl.BlockSpec((tm, C), lambda i: (i, 0)),
        compiler_params=_PARALLEL_1D,
    )(cols, xf, w1m, b1, w2m, b2, wsm, bs)


def pallas_lstm_layer(x2d, w_ih_t, w_hh_t, bias2d, T, B, skip=None):
    """One LSTM layer, fully fused.

    x2d: (T*B, C) time-major input. Computes xg = x@W_ih^T + (b_ih+b_hh) in-kernel,
    then runs the recurrence with (h, c) carried in registers (static unrolled loop),
    W_hh loaded once, and (optionally) the residual skip fused into the output store.
    """
    TB, C = x2d.shape
    H = w_hh_t.shape[0]
    G = 4 * H
    with_skip = skip is not None

    def kernel(*refs):
        if with_skip:
            x_ref, wih_ref, whh_ref, b_ref, skip_ref, y_ref, xg_sc = refs
        else:
            x_ref, wih_ref, whh_ref, b_ref, y_ref, xg_sc = refs
        # Batched input-to-gates matmul (one MXU op for all timesteps).
        xg_sc[...] = jnp.dot(x_ref[...].astype(jnp.bfloat16),
                             wih_ref[...].astype(jnp.bfloat16),
                             preferred_element_type=jnp.float32) + b_ref[...]
        whh = whh_ref[...]                       # hoisted: loaded once
        h = jnp.zeros((B, H), jnp.float32)
        c = jnp.zeros((B, H), jnp.float32)
        for t in range(T):                       # static unroll; h, c stay in vregs
            g = xg_sc[t * B:(t + 1) * B, :] + jnp.dot(
                h, whh, preferred_element_type=jnp.float32)
            ig = jax.nn.sigmoid(g[:, 0:H])
            fg = jax.nn.sigmoid(g[:, H:2 * H])
            gg = jnp.tanh(g[:, 2 * H:3 * H])
            og = jax.nn.sigmoid(g[:, 3 * H:4 * H])
            c = fg * c + ig * gg
            h = og * jnp.tanh(c)
            if with_skip:
                y_ref[t * B:(t + 1) * B, :] = h + skip_ref[t * B:(t + 1) * B, :]
            else:
                y_ref[t * B:(t + 1) * B, :] = h

    inputs = [x2d.astype(jnp.float32), w_ih_t.astype(jnp.float32),
              w_hh_t.astype(jnp.float32), bias2d.astype(jnp.float32)]
    in_specs = [pl.BlockSpec((TB, C), lambda i: (0, 0)),
                pl.BlockSpec((C, G), lambda i: (0, 0)),
                pl.BlockSpec((H, G), lambda i: (0, 0)),
                pl.BlockSpec((1, G), lambda i: (0, 0))]
    if with_skip:
        inputs.append(skip.astype(jnp.float32))
        in_specs.append(pl.BlockSpec((TB, H), lambda i: (0, 0)))
    return pl.pallas_call(
        kernel,
        out_shape=jax.ShapeDtypeStruct((TB, H), jnp.float32),
        grid=(1,),
        in_specs=in_specs,
        out_specs=pl.BlockSpec((TB, H), lambda i: (0, 0)),
        scratch_shapes=[pltpu.VMEM((TB, G), jnp.float32)],
    )(*inputs)


def pallas_rvq(x2d, codebooks, n_used):
    """Fused residual VQ: all n_used codebooks in VMEM, quantizer loop in-kernel.

    x2d: (N, D);  codebooks: (n_q, K, D).  Returns (quantized (N,D), idx (n_used,N,1)).
    """
    N, D = x2d.shape
    cbs = codebooks[:n_used].astype(jnp.float32)            # (n_used, K, D)
    c2 = jnp.sum(cbs * cbs, axis=-1)                        # (n_used, K), tiny
    Kc = cbs.shape[1]

    def kernel(x_ref, cb_ref, c2_ref, q_ref, idx_ref):
        residual = x_ref[...]
        quantized = jnp.zeros_like(residual)
        c2_all = c2_ref[...]
        for qi in range(n_used):                            # static loop
            cb = cb_ref[qi]                                 # (K, D)
            # distances up to a per-row constant: ||c||^2 - 2 x.c  (argmin unchanged)
            xc = lax.dot_general(residual, cb, (((1,), (1,)), ((), ())),
                                 preferred_element_type=jnp.float32)   # (N, K)
            d = c2_all[qi:qi + 1, :] - 2.0 * xc
            dmin = jnp.min(d, axis=1, keepdims=True)
            iota = lax.broadcasted_iota(jnp.int32, d.shape, 1)
            idx = jnp.min(jnp.where(d <= dmin, iota, Kc), axis=1, keepdims=True)
            onehot = (iota == idx).astype(jnp.float32)
            q = jnp.dot(onehot, cb, preferred_element_type=jnp.float32)
            residual = residual - q
            quantized = quantized + q
            idx_ref[qi] = idx.astype(jnp.int32)
        q_ref[...] = quantized

    q, idx = pl.pallas_call(
        kernel,
        out_shape=(jax.ShapeDtypeStruct((N, D), jnp.float32),
                   jax.ShapeDtypeStruct((n_used, N, 1), jnp.int32)),
        grid=(1,),
        in_specs=[pl.BlockSpec((N, D), lambda i: (0, 0)),
                  pl.BlockSpec((n_used, Kc, D), lambda i: (0, 0, 0)),
                  pl.BlockSpec((n_used, Kc), lambda i: (0, 0))],
        out_specs=(pl.BlockSpec((N, D), lambda i: (0, 0)),
                   pl.BlockSpec((n_used, N, 1), lambda i: (0, 0, 0))),
    )(x2d.astype(jnp.float32), cbs, c2)
    return q, idx


# ----------------------------------------------------------------------------
# Conv / LSTM / RVQ building blocks (thin JAX glue, heavy work in Pallas)
# ----------------------------------------------------------------------------

def _causal_cols(x, K, stride, dilation):
    """Causal pad + im2col via K static strided slices (no gather).

    x: (B, Cin, L) -> cols (B*Lout, Cin*K), Lout.  Matches encodec SConv1d padding.
    """
    B, Cin, L = x.shape
    eff_k = (K - 1) * dilation + 1
    pad_total = eff_k - stride
    num = L - eff_k + pad_total
    nf_ceil = -(-num // stride) + 1                  # integer ceil(num/stride) + 1
    ideal = (nf_ceil - 1) * stride + (eff_k - pad_total)
    extra = max(int(ideal - L), 0)
    xp = jnp.pad(x, ((0, 0), (0, 0), (pad_total, extra)))
    Lp = L + pad_total + extra
    Lout = (Lp - eff_k) // stride + 1
    taps = []
    for k in range(K):                               # K static strided slices
        start = k * dilation
        limit = start + (Lout - 1) * stride + 1
        taps.append(lax.slice(xp, (0, 0, start), (B, Cin, limit), (1, 1, stride)))
    cols = jnp.stack(taps, axis=-1)                  # (B, Cin, Lout, K)
    cols = jnp.transpose(cols, (0, 2, 1, 3)).reshape(B * Lout, Cin * K)
    return cols, Lout


def causal_conv1d(x, w, b, stride=1, dilation=1, pre_act=None, act=None, alpha=1.0):
    """Streamable causal conv1d (encodec SConv1d).  x:(B,Cin,L) w:(Cout,Cin,K)."""
    B, Cin, L = x.shape
    Cout, _, K = w.shape
    cols, Lout = _causal_cols(x, K, stride, dilation)
    w2 = jnp.transpose(w.reshape(Cout, Cin * K))     # (Cin*K, Cout)
    y = pallas_matmul(cols, w2, b, pre_act=pre_act, act=act, alpha=alpha)
    return jnp.transpose(y.reshape(B, Lout, Cout), (0, 2, 1))


def causal_conv_transpose1d(x, w, b, stride, pre_act=None, alpha=1.0):
    """Streamable causal conv-transpose1d (encodec SConvTranspose1d, trim_right=1).

    Overlap-add is done with a group reshape / pad / sum (no strided scatter).
    """
    B, Cin, L = x.shape
    _, Cout, K = w.shape
    x2 = jnp.transpose(x, (0, 2, 1)).reshape(B * L, Cin)
    w2 = w.reshape(Cin, Cout * K)
    y = pallas_matmul(x2, w2, pre_act=pre_act, alpha=alpha)      # (B*L, Cout*K)
    y = y.reshape(B, L, Cout, K)

    Kp = -(-K // stride) * stride                    # pad kernel taps to multiple of s
    if Kp != K:
        y = jnp.pad(y, ((0, 0), (0, 0), (0, 0), (0, Kp - K)))
    G = Kp // stride
    Lp = (L - 1) * stride + Kp
    total = None
    for g in range(G):
        yg = y[:, :, :, g * stride:(g + 1) * stride]             # (B, L, Cout, s)
        yg = jnp.transpose(yg, (0, 2, 1, 3)).reshape(B, Cout, L * stride)
        yg = jnp.pad(yg, ((0, 0), (0, 0), (g * stride, (G - 1 - g) * stride)))
        total = yg if total is None else total + yg
    out = total + b[None, :, None]
    # causal, trim_right_ratio=1.0: drop all (K - stride) padding from the right
    return out[:, :, :L * stride]


def resnet_block(x, p, alpha):
    """Fused SEANet residual block (one pallas_call)."""
    B, C, L = x.shape
    w1, b1 = p['conv1']                              # (Cmid, C, K1)
    w2, b2 = p['conv2']                              # (C, Cmid, 1)
    ws, bs = p['short']                              # (C, C, 1) 1x1 shortcut (true_skip=False)
    K1 = w1.shape[2]
    cols, Lout = _causal_cols(x, K1, 1, p['dilation'])
    assert Lout == L
    xf = jnp.transpose(x, (0, 2, 1)).reshape(B * L, C)
    w1m = jnp.transpose(w1.reshape(w1.shape[0], -1))
    w2m = jnp.transpose(w2.reshape(w2.shape[0], -1))
    wsm = jnp.transpose(ws.reshape(ws.shape[0], -1))
    out = _resblock_call(cols.astype(jnp.float32), xf.astype(jnp.float32),
                         w1m.astype(jnp.float32), b1.reshape(1, -1).astype(jnp.float32),
                         w2m.astype(jnp.float32), b2.reshape(1, -1).astype(jnp.float32),
                         wsm.astype(jnp.float32), bs.reshape(1, -1).astype(jnp.float32),
                         alpha)
    return jnp.transpose(out.reshape(B, L, C), (0, 2, 1))


def slstm(x, layers):
    """SLSTM: (B,C,T) -> time-major -> LSTM stack -> + skip (fused) -> (B,C,T)."""
    B, C, T = x.shape
    xt = jnp.transpose(x, (2, 0, 1)).reshape(T * B, C)           # time-major 2-D
    skip = xt
    h = xt
    H = C
    n = len(layers)
    for li, (w_ih, w_hh, b_ih, b_hh) in enumerate(layers):
        h = pallas_lstm_layer(h, jnp.transpose(w_ih), jnp.transpose(w_hh),
                              (b_ih + b_hh).reshape(1, -1), T, B,
                              skip=(skip if li == n - 1 else None))
    return jnp.transpose(h.reshape(T, B, H), (1, 2, 0))


def rvq_forward(x_bdn, codebooks, n_used):
    """Residual vector quantization, eval semantics (losses = 0), single fused kernel."""
    B, D, Nt = x_bdn.shape
    flat = jnp.transpose(x_bdn, (0, 2, 1)).reshape(B * Nt, D)
    quantized, idx = pallas_rvq(flat, codebooks, n_used)
    quantized = jnp.transpose(quantized.reshape(B, Nt, D), (0, 2, 1))
    out_indices = idx.reshape(n_used, B, Nt)
    out_losses = jnp.zeros((n_used,), jnp.float32)
    # TODO(synk): training-mode EMA codebook update, dead-code expiration and commitment
    # loss (and straight-through gradient) are not represented in this forward kernel.
    return quantized, out_indices, out_losses


# ----------------------------------------------------------------------------
# SEANet encoder / decoder / full VQMSStream forward
# ----------------------------------------------------------------------------

def encoder_forward(p, x, cfg):
    alpha = cfg['alpha']
    h = causal_conv1d(x, *p['conv0'])
    for st in p['stages']:
        for rb in st['res']:
            h = resnet_block(h, rb, alpha)
        # ELU fused as pre-activation of the strided down-conv
        h = causal_conv1d(h, *st['down'], stride=st['ratio'], pre_act='elu', alpha=alpha)
    h = slstm(h, p['lstm'])
    h = causal_conv1d(h, *p['final'], pre_act='elu', alpha=alpha)
    return h


def decoder_forward(p, z, cfg):
    alpha = cfg['alpha']
    h = causal_conv1d(z, *p['conv0'])
    h = slstm(h, p['lstm'])
    for st in p['stages']:
        # ELU fused as pre-activation of the up-conv matmul
        h = causal_conv_transpose1d(h, *st['up'], stride=st['ratio'],
                                    pre_act='elu', alpha=alpha)
        for rb in st['res']:
            h = resnet_block(h, rb, alpha)
    # final ELU (pre-act) and Tanh (epilogue) both fused into the last conv matmul
    h = causal_conv1d(h, *p['final'], pre_act='elu', act='tanh', alpha=alpha)
    return h


def vqms_forward(params, x, cfg, n_used):
    z = encoder_forward(params['encoder'], x, cfg)               # (B, dimension, T_enc)
    B = z.shape[0]
    flatten = z.shape[1] * z.shape[2]
    qdim = cfg['quant_dim']
    assert flatten % qdim == 0, "config chosen so quantizationdim divides flattenShape"
    xq = z.reshape(B, qdim, flatten // qdim)                     # x.view(B, quantizationdim, -1)
    before_q = xq
    quantized, out_idx, out_losses = rvq_forward(xq, params['codebooks'], n_used)
    y = decoder_forward(params['decoder'], quantized, cfg)
    if y.shape[2] != x.shape[2]:
        y = y[:, :, :x.shape[2]]
    return y, out_losses, before_q


# ----------------------------------------------------------------------------
# Deterministic parameter init
# ----------------------------------------------------------------------------

def _norm_init(key, shape, scale):
    return jax.random.normal(key, shape, jnp.float32) * scale


def init_params(key, cfg):
    keys = iter(jax.random.split(key, 512))
    nxt = lambda: next(keys)

    def conv_p(cout, cin, k):
        return (_norm_init(nxt(), (cout, cin, k), 1.0 / math.sqrt(cin * k)),
                _norm_init(nxt(), (cout,), 0.01))

    def convT_p(cin, cout, k):
        return (_norm_init(nxt(), (cin, cout, k), 1.0 / math.sqrt(cin * k)),
                _norm_init(nxt(), (cout,), 0.01))

    def lstm_p(h):
        return (_norm_init(nxt(), (4 * h, h), 1.0 / math.sqrt(h)),
                _norm_init(nxt(), (4 * h, h), 1.0 / math.sqrt(h)),
                _norm_init(nxt(), (4 * h,), 0.01),
                _norm_init(nxt(), (4 * h,), 0.01))

    nf, comp = cfg['n_filters'], 2

    enc = {'conv0': conv_p(nf, cfg['in_ch'], cfg['kernel_size'])}
    mult = 1
    stages = []
    for r in reversed(cfg['ratios']):
        ch = mult * nf
        res = []
        for j in range(cfg['n_res']):
            res.append(dict(conv1=conv_p(ch // comp, ch, cfg['res_kernel']),
                            conv2=conv_p(ch, ch // comp, 1),
                            short=conv_p(ch, ch, 1),
                            dilation=cfg['dil_base'] ** j))
        stages.append(dict(res=res, down=conv_p(2 * ch, ch, 2 * r), ratio=r))
        mult *= 2
    enc['stages'] = stages
    H = mult * nf
    enc['lstm'] = [lstm_p(H) for _ in range(cfg['lstm'])]
    enc['final'] = conv_p(cfg['dimension'], H, cfg['last_kernel_size'])

    dec = {'conv0': conv_p(H, cfg['dimension'], cfg['kernel_size']),
           'lstm': [lstm_p(H) for _ in range(cfg['lstm'])]}
    dstages = []
    m2 = mult
    for r in cfg['ratios']:
        ch = m2 * nf
        oc = ch // 2
        res = []
        for j in range(cfg['n_res']):
            res.append(dict(conv1=conv_p(oc // comp, oc, cfg['res_kernel']),
                            conv2=conv_p(oc, oc // comp, 1),
                            short=conv_p(oc, oc, 1),
                            dilation=cfg['dil_base'] ** j))
        dstages.append(dict(up=convT_p(ch, oc, 2 * r), res=res, ratio=r))
        m2 //= 2
    dec['stages'] = dstages
    dec['final'] = conv_p(cfg['in_ch'], nf, cfg['last_kernel_size'])

    # TODO(synk): k-means codebook init from the first batch is replaced by a
    # deterministic Gaussian init (synthetic weights, no checkpoint).
    codebooks = _norm_init(nxt(), (cfg['n_q'], cfg['codebook_size'], cfg['quant_dim']), 1.0)
    return dict(encoder=enc, decoder=dec, codebooks=codebooks)


# ----------------------------------------------------------------------------
# Main
# ----------------------------------------------------------------------------

if __name__ == "__main__":
    # Small config consistent with the module's structure (SEANet enc/dec + RVQ):
    cfg = dict(in_ch=1, dimension=32, n_filters=4, n_res=1, ratios=[4, 2],
               kernel_size=7, last_kernel_size=7, res_kernel=3, dil_base=2,
               lstm=1, n_q=2, codebook_size=64, quant_dim=32, alpha=1.0)

    key = jax.random.PRNGKey(0)
    pkey, xkey = jax.random.split(key)
    params = init_params(pkey, cfg)
    x = jax.random.normal(xkey, (2, 1, 64), jnp.float32)   # (B, C, T) = (2, 1, 64)

    # quantizer dropout (applyquantizerdroput=True, np.random.default_rng(42))
    rng = np.random.default_rng(42)
    if rng.random() >= 0.5:
        n_used = int(rng.integers(1, cfg['n_q'] + 1))
    else:
        n_used = cfg['n_q']

    out, losses, before_q = vqms_forward(params, x, cfg, n_used)
    jax.block_until_ready((out, losses, before_q))
    assert out.shape == x.shape
    assert before_q.shape == (2, cfg['quant_dim'], 8)
    print("KERNEL_OK")
</pallas_src>

<mosaic_0001>
module attributes {stable_mosaic.version = 11 : i64} {
  func.func @kernel(%arg0: i32, %arg1: memref<128x7xf32, #tpu.memory_space<vmem>>, %arg2: memref<7x4xf32, #tpu.memory_space<vmem>>, %arg3: memref<1x4xf32, #tpu.memory_space<vmem>>, %arg4: memref<128x4xf32, #tpu.memory_space<vmem>>) attributes {dimension_semantics = [#tpu.dimension_semantics<parallel>], iteration_bounds = array<i64: 1>, scalar_prefetch = 0 : i64, scratch_operands = 0 : i64, tpu.core_type = #tpu.core_type<tc>, window_params = [{transform_indices = @transform_0, window_bounds = array<i64: 128, 7>}, {pipeline_mode = #tpu.pipeline_mode<synchronous>, transform_indices = @transform_1, window_bounds = array<i64: 7, 4>}, {pipeline_mode = #tpu.pipeline_mode<synchronous>, transform_indices = @transform_2, window_bounds = array<i64: 1, 4>}, {transform_indices = @transform_3, window_bounds = array<i64: 128, 4>}]} {
    %c0 = arith.constant 0 : index
    %c0_0 = arith.constant 0 : index
    %0 = vector.load %arg1[%c0, %c0_0] : memref<128x7xf32, #tpu.memory_space<vmem>>, vector<128x7xf32>
    %1 = arith.truncf %0 : vector<128x7xf32> to vector<128x7xbf16>
    %c0_1 = arith.constant 0 : index
    %c0_2 = arith.constant 0 : index
    %2 = vector.load %arg2[%c0_1, %c0_2] : memref<7x4xf32, #tpu.memory_space<vmem>>, vector<7x4xf32>
    %3 = arith.truncf %2 : vector<7x4xf32> to vector<7x4xbf16>
    %cst = arith.constant dense<0.000000e+00> : vector<128x4xf32>
    %4 = tpu.matmul %1, %3, %cst {dimension_numbers = #tpu.dot_dimension_numbers<[1], [0], [0], [1], [0, 0, 1, 1], [], []>} : vector<128x7xbf16>, vector<7x4xbf16>, vector<128x4xf32> -> vector<128x4xf32>
    %c0_3 = arith.constant 0 : index
    %c0_4 = arith.constant 0 : index
    %5 = vector.load %arg3[%c0_3, %c0_4] : memref<1x4xf32, #tpu.memory_space<vmem>>, vector<1x4xf32>
    %6 = vector.broadcast %5 : vector<1x4xf32> to vector<128x4xf32>
    %7 = arith.addf %4, %6 : vector<128x4xf32>
    %c0_5 = arith.constant 0 : index
    %c0_6 = arith.constant 0 : index
    %8 = vector.load %arg4[%c0_5, %c0_6] : memref<128x4xf32, #tpu.memory_space<vmem>>, vector<128x4xf32>
    tpu.vector_store %arg4[%c0_5, %c0_6], %7 {strides = array<i32>} : memref<128x4xf32, #tpu.memory_space<vmem>>, vector<128x4xf32>,
    return
  }
  func.func @transform_0(%arg0: i32) -> (i32, i32) {
    %c0_i32 = arith.constant 0 : i32
    %c0_i32_0 = arith.constant 0 : i32
    return %arg0, %c0_i32 : i32, i32
  }
  func.func @transform_1(%arg0: i32) -> (i32, i32) {
    %c0_i32 = arith.constant 0 : i32
    %c0_i32_0 = arith.constant 0 : i32
    %c0_i32_1 = arith.constant 0 : i32
    return %c0_i32, %c0_i32_0 : i32, i32
  }
  func.func @transform_2(%arg0: i32) -> (i32, i32) {
    %c0_i32 = arith.constant 0 : i32
    %c0_i32_0 = arith.constant 0 : i32
    %c0_i32_1 = arith.constant 0 : i32
    return %c0_i32, %c0_i32_0 : i32, i32
  }
  func.func @transform_3(%arg0: i32) -> (i32, i32) {
    %c0_i32 = arith.constant 0 : i32
    %c0_i32_0 = arith.constant 0 : i32
    return %arg0, %c0_i32 : i32, i32
  }
}

</mosaic_0001>

<bundles_post_ra>
// kernel: tpu_custom_call.1
= control target key start
LH: loop header
LB: loop body
LE: loop exit
PB: predicated region body
PF: predicated region fallthrough
CT: control target
= control target key end

     0   :  { %vm70_vm0 = vcmask 1042432   ;;  %vm71_vm1 = vcmask 1043456   ;;  %v160_v1 = vmov 65535   ;;  %vm45_vm2 = vcmask 56320   ;;  %s307_s1 = inlined_call_operand.vmem [shape: f32[7,4], index: 1, kind: input, shape index: {}]   ;;  %s308_s0 = inlined_call_operand.vmem [shape: f32[128,7], index: 0, kind: input, shape index: {}]   ;;  %s309_s2 = inlined_call_operand.vmem [shape: f32[1,4], index: 2, kind: input, shape index: {}]   ;;  %s310_s3 = inlined_call_operand.vmem [shape: f32[128,4], index: 3, kind: output, shape index: {}]  }
   0x1   :  { %v39_v0 = vld [vmem:[%s307_s1] sm:$0x7f]  ;;  %v72_v2 = vsel %vm70_vm0, 4294967295, %v160_v1  ;;  %v16_v4 = vld [vmem:[%s308_s0 + $0x8] sm:$0xff]  ;;  %v17_v18 = vld [vmem:[%s308_s0 + $0x10] sm:$0xff]  ;;  %vm126_vm3 = vcmask 31744  }
   0x2   :  { %v15_v3 = vld [vmem:[%s308_s0] sm:$0xff]  ;;  %v40_v5 = vpack.c.bf16 %v39_v0, %v39_v0  ;;  %v73_v6 = vsel %vm71_vm1, %v72_v2, 0  ;;  %v20_v8 = vld [vmem:[%s308_s0 + $0x28] sm:$0xff]  ;;  %v18_v19 = vld [vmem:[%s308_s0 + $0x18] sm:$0xff] }
   0x3   :  { %v19_v7 = vld [vmem:[%s308_s0 + $0x20] sm:$0xff]  ;;  %v24_v10 = vld [vmem:[%s308_s0 + $0x48] sm:$0xff]  ;;  %v31_v14 = vpack.c.bf16 %v16_v4, %v15_v3  ;;  %v21_v20 = vld [vmem:[%s308_s0 + $0x30] sm:$0xff]  ;;  %v32_v26 = vpack.c.bf16 %v18_v19, %v17_v18 }
   0x4   :  { %v23_v9 = vld [vmem:[%s308_s0 + $0x40] sm:$0xff]  ;;  %v28_v12 = vld [vmem:[%s308_s0 + $0x68] sm:$0xff]  ;;  %v75_v13 = vand.u32 %v73_v6, %v40_v5  ;;  %v33_v15 = vpack.c.bf16 %v20_v8, %v19_v7  ;;  %v22_v21 = vld [vmem:[%s308_s0 + $0x38] sm:$0xff] }
   0x5   :  { %v27_v11 = vld [vmem:[%s308_s0 + $0x60] sm:$0xff]  ;;  %v35_v16 = vpack.c.bf16 %v24_v10, %v23_v9  ;;  %v25_v22 = vld [vmem:[%s308_s0 + $0x50] sm:$0xff]  ;;  %v26_v23 = vld [vmem:[%s308_s0 + $0x58] sm:$0xff]  ;;  %v34_v27 = vpack.c.bf16 %v22_v21, %v21_v20 }
   0x6   :  { %84 = vmatpush.bf16.msra.mxu0 %v75_v13  ;;  %155 = vmatpush.bf16.msra.mxu1 %v75_v13  ;;  %v37_v17 = vpack.c.bf16 %v28_v12, %v27_v11  ;;  %v29_v24 = vld [vmem:[%s308_s0 + $0x70] sm:$0xff]  ;;  %v30_v25 = vld [vmem:[%s308_s0 + $0x78] sm:$0xff]  ;;  %v36_v28 = vpack.c.bf16 %v26_v23, %v25_v22  ;;  %v159_v30 = vld [vmem:[%s309_s2] ss:$0 sm:$0xff] }
   0x7   :  { %156 = vmatpush.bf16.msra.mxu2 %v75_v13  ;;  %157 = vmatpush.bf16.msra.mxu3 %v75_v13  ;;  %v38_v29 = vpack.c.bf16 %v30_v25, %v29_v24 }
   0x9   :  { %147 = vmatmul.msk.bf16.vlgmr.msra.gmra.mxu0 %vm45_vm2, %v31_v14  ;;  %149 = vmatmul.msk.bf16.vlgmr.msra.gmra.mxu1 %vm45_vm2, %v33_v15 }
   0xa   :  { %151 = vmatmul.msk.bf16.vlgmr.msra.gmra.mxu2 %vm45_vm2, %v35_v16  ;;  %153 = vmatmul.msk.bf16.vlgmr.msra.gmra.mxu3 %vm45_vm2, %v37_v17 }
  0x19   :  { %148 = vmatmul.msk.bf16.gmra.mxu0 %vm45_vm2, %v32_v26  ;;  %150 = vmatmul.msk.bf16.gmra.mxu1 %vm45_vm2, %v34_v27 }
  0x1a   :  { %152 = vmatmul.msk.bf16.gmra.mxu2 %vm45_vm2, %v36_v28  ;;  %154 = vmatmul.msk.bf16.gmra.mxu3 %vm45_vm2, %v38_v29 }
  0x86   :  { %v86_v31 = vpop.f32.mrf.mxu0  ;;  %v96_v32 = vpop.f32.mrf.mxu1 }
  0x87   :  { %v87_v33 = vadd.f32 %v159_v30, %v86_v31  ;;  %v97_v34 = vadd.f32 %v159_v30, %v96_v32 }
  0x89   :  { %127 = vst.msk [vmem:[%s310_s3] sm:$0xff] %vm126_vm3, %v87_v33 }
  0x8a   :  { %131 = vst.msk [vmem:[%s310_s3 + $0x20] sm:$0xff] %vm126_vm3, %v97_v34 }
  0x8d   :  { %v106_v35 = vpop.f32.mrf.mxu2  ;;  %v116_v36 = vpop.f32.mrf.mxu3 }
  0x8e   :  { %v107_v37 = vadd.f32 %v159_v30, %v106_v35  ;;  %v117_v38 = vadd.f32 %v159_v30, %v116_v36  ;;  %v88_v39 = vpop.f32.mrf.mxu0  ;;  %v98_v40 = vpop.f32.mrf.mxu1 }
  0x8f   :  { %v89_v41 = vadd.f32 %v159_v30, %v88_v39  ;;  %v99_v42 = vadd.f32 %v159_v30, %v98_v40 }
  0x90   :  { %135 = vst.msk [vmem:[%s310_s3 + $0x40] sm:$0xff] %vm126_vm3, %v107_v37 }
  0x91   :  { %139 = vst.msk [vmem:[%s310_s3 + $0x60] sm:$0xff] %vm126_vm3, %v117_v38 }
  0x92   :  { %128 = vst.msk [vmem:[%s310_s3 + $0x8] sm:$0xff] %vm126_vm3, %v89_v41 }
  0x93   :  { %132 = vst.msk [vmem:[%s310_s3 + $0x28] sm:$0xff] %vm126_vm3, %v99_v42 }
  0x95   :  { %v108_v43 = vpop.f32.mrf.mxu2  ;;  %v118_v44 = vpop.f32.mrf.mxu3 }
  0x96   :  { %v109_v45 = vadd.f32 %v159_v30, %v108_v43  ;;  %v119_v46 = vadd.f32 %v159_v30, %v118_v44  ;;  %v91_v47 = vpop.f32.mrf.mxu0  ;;  %v101_v48 = vpop.f32.mrf.mxu1 }
  0x97   :  { %v92_v49 = vadd.f32 %v159_v30, %v91_v47  ;;  %v102_v50 = vadd.f32 %v159_v30, %v101_v48 }
  0x98   :  { %136 = vst.msk [vmem:[%s310_s3 + $0x48] sm:$0xff] %vm126_vm3, %v109_v45 }
  0x99   :  { %140 = vst.msk [vmem:[%s310_s3 + $0x68] sm:$0xff] %vm126_vm3, %v119_v46 }
  0x9a   :  { %129 = vst.msk [vmem:[%s310_s3 + $0x10] sm:$0xff] %vm126_vm3, %v92_v49 }
  0x9b   :  { %133 = vst.msk [vmem:[%s310_s3 + $0x30] sm:$0xff] %vm126_vm3, %v102_v50 }
  0x9d   :  { %v111_v51 = vpop.f32.mrf.mxu2  ;;  %v121_v52 = vpop.f32.mrf.mxu3 }
  0x9e   :  { %v112_v53 = vadd.f32 %v159_v30, %v111_v51  ;;  %v122_v54 = vadd.f32 %v159_v30, %v121_v52  ;;  %v93_v55 = vpop.f32.mrf.mxu0  ;;  %v103_v56 = vpop.f32.mrf.mxu1 }
  0x9f   :  { %v94_v57 = vadd.f32 %v159_v30, %v93_v55  ;;  %v104_v58 = vadd.f32 %v159_v30, %v103_v56 }
  0xa0   :  { %137 = vst.msk [vmem:[%s310_s3 + $0x50] sm:$0xff] %vm126_vm3, %v112_v53 }
  0xa1   :  { %141 = vst.msk [vmem:[%s310_s3 + $0x70] sm:$0xff] %vm126_vm3, %v122_v54 }
  0xa2   :  { %130 = vst.msk [vmem:[%s310_s3 + $0x18] sm:$0xff] %vm126_vm3, %v94_v57 }
  0xa3   :  { %134 = vst.msk [vmem:[%s310_s3 + $0x38] sm:$0xff] %vm126_vm3, %v104_v58 }
  0xa5   :  { %v113_v59 = vpop.f32.mrf.mxu2  ;;  %v123_v60 = vpop.f32.mrf.mxu3 }
  0xa6   :  { %v114_v61 = vadd.f32 %v159_v30, %v113_v59  ;;  %v124_v62 = vadd.f32 %v159_v30, %v123_v60 }
  0xa8   :  { %138 = vst.msk [vmem:[%s310_s3 + $0x58] sm:$0xff] %vm126_vm3, %v114_v61 }
  0xa9   :  { %142 = vst.msk [vmem:[%s310_s3 + $0x78] sm:$0xff] %vm126_vm3, %v124_v62 }

</bundles_post_ra>
